<compile_context>
chip_gen: v5e
topology: v5e:2x2
jax: 0.10.0
libtpu: 0.0.40
codegen_flags: <defaults>
</compile_context>

<pallas_src>
import jax
import jax.numpy as jnp
from jax.experimental import pallas as pl
from jax.experimental.pallas import tpu as pltpu


def _round_up(x, m):
    return ((x + m - 1) // m) * m


def attention_kernel(x_ref, o_ref):
    # x_ref: (Bb, T, H) block of lstm outputs (H -> lanes, T -> sublanes)
    # o_ref: (Bb, H)    context vectors (sublane/lane-dense writeback)
    T = x_ref.shape[1]

    # Whole slab once; promote to f32 so bf16 inputs stay on a fast/correct
    # path on v5e (no bf16 VPU/EUP) and the softmax accumulates in f32.
    x = x_ref[...].astype(jnp.float32)                       # (Bb, T, H)

    # h_T = last timestep, read directly from the ref.
    h_t = x_ref[:, pl.ds(T - 1, 1), :].astype(jnp.float32)   # (Bb, 1, H)

    # attention scores: <x_t, h_T> per (batch row, timestep) -> (Bb, T)
    scores = jnp.sum(x * h_t, axis=2)

    # numerically-stable softmax over the sequence axis
    m = jnp.max(scores, axis=1, keepdims=True)               # (Bb, 1)
    e = jnp.exp(scores - m)                                   # (Bb, T)
    denom = jnp.sum(e, axis=1, keepdims=True)                 # (Bb, 1)
    alpha = e * pl.reciprocal(denom, approx=True)             # EUP, not VPU div

    # context vector: alpha-weighted sum over timesteps -> (Bb, H)
    ctx = jnp.sum(alpha[:, :, None] * x, axis=1)
    o_ref[...] = ctx.astype(o_ref.dtype)


def _select_block_b(B, T, H, itemsize):
    """Pick batch rows per grid step.

    Multiple of 8 (dense sublane stores), sized so the double-buffered input
    tile stays around 16 MiB (well inside the scoped-VMEM cap requested
    below on every generation), and >=2 grid steps when B allows so v7x's
    two TensorCores both get work on the 'parallel' grid axis.
    """
    row_bytes = max(T * H * itemsize, 1)
    per_buffer_budget = 8 * 1024 * 1024          # x2 for double buffering
    bb = max(8, (per_buffer_budget // row_bytes) // 8 * 8)
    bb = min(bb, 1024)
    bb = min(bb, _round_up(B, 8))                # no point exceeding padded B
    if B > 8:
        bb = min(bb, _round_up(-(-B // 2), 8))   # keep at least 2 grid steps
    return max(bb, 8)


def attention(lstm_out, *, block_b=None):
    """Pallas TPU forward of the PyTorch `Attention` module.

    lstm_out: (B, T, H). Returns (B, H) context vectors (same dtype).
    """
    B, T, H = lstm_out.shape
    dtype = lstm_out.dtype
    itemsize = jnp.dtype(dtype).itemsize

    if block_b is None:
        block_b = _select_block_b(B, T, H, itemsize)

    # Pad the batch so every grid step sees a full (block_b, T, H) slab.
    # Zero rows give a uniform softmax over zeros -> zero context; they are
    # sliced off below and never touch real rows.
    B_pad = _round_up(B, block_b)
    x = lstm_out
    if B_pad != B:
        x = jnp.pad(x, ((0, B_pad - B), (0, 0), (0, 0)))

    grid = (B_pad // block_b,)

    # TODO(synk): for very large T*H where a single (Bb, T, H) tile cannot fit
    # VMEM (esp. v7x's 64 MiB), add a T grid axis marked 'arbitrary' with an
    # online-softmax accumulator in VMEM scratch.
    out = pl.pallas_call(
        attention_kernel,
        out_shape=jax.ShapeDtypeStruct((B_pad, H), dtype),
        grid=grid,
        in_specs=[pl.BlockSpec((block_b, T, H), lambda b: (b, 0, 0))],
        out_specs=pl.BlockSpec((block_b, H), lambda b: (b, 0)),
        compiler_params=pltpu.CompilerParams(
            dimension_semantics=("parallel",),
            # Above the 16/32 MiB scoped defaults so the batched tiles fit;
            # still under v7x's 64 MiB physical and v5e/v6e's 128 MiB.
            vmem_limit_bytes=48 * 1024 * 1024,
        ),
    )(x)

    return out[:B] if B_pad != B else out


def attention_ref(lstm_out):
    # pure-JAX reference mirroring the PyTorch forward
    h_t = lstm_out[:, -1, :]                                 # (B, H)
    scores = jnp.einsum("bth,bh->bt", lstm_out, h_t)         # (B, T)
    alpha = jax.nn.softmax(scores, axis=1)                   # (B, T)
    return jnp.einsum("bt,bth->bh", alpha, lstm_out)         # (B, H)


if __name__ == "__main__":
    B, T, H = 2, 8, 32
    key = jax.random.PRNGKey(0)
    lstm_out = jax.random.normal(key, (B, T, H), dtype=jnp.float32)

    out = attention(lstm_out)
    out = jax.block_until_ready(out)

    ref = attention_ref(lstm_out)
    assert out.shape == (B, H)
    # tolerance loosened slightly for the approximate (EUP) reciprocal
    assert jnp.allclose(out, ref, atol=1e-3, rtol=1e-3), "mismatch vs reference"
    print("KERNEL_OK")
</pallas_src>

<mosaic_0001>
module attributes {stable_mosaic.version = 11 : i64} {
  func.func @attention_kernel(%arg0: i32, %arg1: memref<8x8x32xf32, #tpu.memory_space<vmem>>, %arg2: memref<8x32xf32, #tpu.memory_space<vmem>>) attributes {dimension_semantics = [#tpu.dimension_semantics<parallel>], iteration_bounds = array<i64: 1>, scalar_prefetch = 0 : i64, scratch_operands = 0 : i64, tpu.core_type = #tpu.core_type<tc>, window_params = [{transform_indices = @transform_0, window_bounds = array<i64: 8, 8, 32>}, {transform_indices = @transform_1, window_bounds = array<i64: 8, 32>}]} {
    %c0 = arith.constant 0 : index
    %c0_0 = arith.constant 0 : index
    %c0_1 = arith.constant 0 : index
    %0 = vector.load %arg1[%c0, %c0_0, %c0_1] : memref<8x8x32xf32, #tpu.memory_space<vmem>>, vector<8x8x32xf32>
    %c0_2 = arith.constant 0 : index
    %c7 = arith.constant 7 : index
    %c0_3 = arith.constant 0 : index
    %1 = vector.load %arg1[%c0_2, %c7, %c0_3] : memref<8x8x32xf32, #tpu.memory_space<vmem>>, vector<8x1x32xf32>
    %2 = vector.broadcast %1 : vector<8x1x32xf32> to vector<8x8x32xf32>
    %3 = arith.mulf %0, %2 : vector<8x8x32xf32>
    %cst = arith.constant dense<0.000000e+00> : vector<8x8xf32>
    %4 = vector.multi_reduction <add>, %3, %cst [2] : vector<8x8x32xf32> to vector<8x8xf32>
    %cst_4 = arith.constant dense<0xFF800000> : vector<8xf32>
    %5 = vector.multi_reduction <maximumf>, %4, %cst_4 [1] : vector<8x8xf32> to vector<8xf32>
    %6 = vector.shape_cast %5 : vector<8xf32> to vector<8x1xf32>
    %7 = vector.broadcast %6 : vector<8x1xf32> to vector<8x8xf32>
    %8 = arith.subf %4, %7 : vector<8x8xf32>
    %9 = math.exp %8 : vector<8x8xf32>
    %cst_5 = arith.constant dense<0.000000e+00> : vector<8xf32>
    %10 = vector.multi_reduction <add>, %9, %cst_5 [1] : vector<8x8xf32> to vector<8xf32>
    %11 = vector.shape_cast %10 : vector<8xf32> to vector<8x1xf32>
    %12 = tpu.reciprocal %11 {approx = true} : vector<8x1xf32> -> vector<8x1xf32>
    %13 = vector.broadcast %12 : vector<8x1xf32> to vector<8x8xf32>
    %14 = arith.mulf %9, %13 : vector<8x8xf32>
    %15 = vector.shape_cast %14 : vector<8x8xf32> to vector<8x8x1xf32>
    %16 = vector.broadcast %15 : vector<8x8x1xf32> to vector<8x8x32xf32>
    %17 = arith.mulf %16, %0 : vector<8x8x32xf32>
    %cst_6 = arith.constant dense<0.000000e+00> : vector<8x32xf32>
    %18 = vector.multi_reduction <add>, %17, %cst_6 [1] : vector<8x8x32xf32> to vector<8x32xf32>
    %c0_7 = arith.constant 0 : index
    %c0_8 = arith.constant 0 : index
    %19 = vector.load %arg2[%c0_7, %c0_8] : memref<8x32xf32, #tpu.memory_space<vmem>>, vector<8x32xf32>
    tpu.vector_store %arg2[%c0_7, %c0_8], %18 {strides = array<i32>} : memref<8x32xf32, #tpu.memory_space<vmem>>, vector<8x32xf32>,
    return
  }
  func.func @transform_0(%arg0: i32) -> (i32, i32, i32) {
    %c0_i32 = arith.constant 0 : i32
    %c0_i32_0 = arith.constant 0 : i32
    %c0_i32_1 = arith.constant 0 : i32
    return %arg0, %c0_i32, %c0_i32_0 : i32, i32, i32
  }
  func.func @transform_1(%arg0: i32) -> (i32, i32) {
    %c0_i32 = arith.constant 0 : i32
    %c0_i32_0 = arith.constant 0 : i32
    return %arg0, %c0_i32 : i32, i32
  }
}

</mosaic_0001>

<bundles_post_ra>
// kernel: tpu_custom_call.1
= control target key start
LH: loop header
LB: loop body
LE: loop exit
PB: predicated region body
PF: predicated region fallthrough
CT: control target
= control target key end

     0   :  { %6 = vsyncpa [#allocation3], 0  ;;  %s576_s0 = inlined_call_operand.hbm [shape: f32[8,8,32], index: 0, kind: input, shape index: {}]   ;;  %s577_s1 = inlined_call_operand.hbm [shape: f32[8,32], index: 1, kind: output, shape index: {}]  }
   0x1   :  { %7 = vsyncpa [#allocation4], 0  ;;  %s12_s8 = sshll.u32 %s576_s0, 4  ;;  %s461_s9 = smov [#allocation2]   ;;  %s13_s8 = int_to_ptr.hbm [resolvable:$true] %s12_s8 }
   0x2   :  { %s14_s10 = sshll.u32 %s461_s9, 4  ;;  %s462_s11 = smov 128   ;;  %s15_s10 = int_to_ptr.vmem [resolvable:$true] %s14_s10 }
   0x3   :  { %s463_s12 = smov 8  }
   0x4   :  { %20 = dma.hbm_to_vmem [thread:$0]  %s13_s8, 1024, %s15_s10, [#allocation3], %s462_s11, %s462_s11, %s463_s12  }
   0x5   :  { %457 = dma.done.wait [#allocation3], 1024  }
   0x6   :  { %458 = vsyncadd [#allocation3], 4294966272  ;;  %v479_v0 = vld [vmem:[#allocation2] sm:$0xff]  ;;  %vm57_vm0 = vcmask 261120   ;;  %v481_v2 = vld [vmem:[#allocation2 + $0x10] sm:$0xff]  ;;  %v90_v33 = vlaneseq  ;;  %vm100_vm1 = vcmask 1041409  }
   0x7   :  { %v383_v1 = vld [vmem:[#allocation2 + $0x7] ss:$0 sm:$0xff]  ;;  %v384_v3 = vld [vmem:[#allocation2 + $0x17] ss:$0 sm:$0xff]  ;;  %v487_v8 = vld [vmem:[#allocation2 + $0x8] sm:$0xff]  ;;  %vm102_vm2 = vcmask 1042434  }
   0x8   :  { %v49_v4 = vmul.f32 %v383_v1, %v479_v0  ;;  %v484_v5 = vld [vmem:[#allocation2 + $0x20] sm:$0xff]  ;;  %v51_v7 = vmul.f32 %v384_v3, %v481_v2  ;;  %v386_v9 = vld [vmem:[#allocation2 + $0xf] ss:$0 sm:$0xff]  ;;  %v491_v12 = vld [vmem:[#allocation2 + $0x18] sm:$0xff]  ;;  %v511_v36 = vand.u32 127, %v90_v33  ;;  %vm104_vm3 = vcmask 1043459  }
   0x9   :  { %v385_v6 = vld [vmem:[#allocation2 + $0x27] ss:$0 sm:$0xff]  ;;  %v387_v13 = vld [vmem:[#allocation2 + $0x1f] ss:$0 sm:$0xff]  ;;  %v494_v15 = vld [vmem:[#allocation2 + $0x28] sm:$0xff]  ;;  %v50_v18 = vmul.f32 %v386_v9, %v487_v8  ;;  %vm106_vm4 = vcmask 1044484  }
   0xa   :  { %v58_v10 = vsel %vm57_vm0, %v49_v4, 0.0  ;;  %v53_v11 = vmul.f32 %v385_v6, %v484_v5  ;;  %v64_v14 = vsel %vm57_vm0, %v51_v7, 0.0  ;;  %v388_v16 = vld [vmem:[#allocation2 + $0x2f] ss:$0 sm:$0xff]  ;;  %v52_v19 = vmul.f32 %v387_v13, %v491_v12  ;;  %v389_v22 = vld [vmem:[#allocation2 + $0x37] ss:$0 sm:$0xff] }
   0xb   :  { %59 = vadd.xlane.f32.xlu0 %v58_v10  ;;  %65 = vadd.xlane.f32.xlu1 %v64_v14  ;;  %v54_v20 = vmul.f32 %v388_v16, %v494_v15  ;;  %v61_v21 = vsel %vm57_vm0, %v50_v18, 0.0  ;;  %v502_v24 = vld [vmem:[#allocation2 + $0x30] sm:$0xff]  ;;  %v390_v25 = vld [vmem:[#allocation2 + $0x3f] ss:$0 sm:$0xff]  ;;  %vm108_vm5 = vcmask 1045509   ;;  %vm110_vm6 = vcmask 1046534  }
   0xc   :  { %v70_v17 = vsel %vm57_vm0, %v53_v11, 0.0  ;;  %v67_v23 = vsel %vm57_vm0, %v52_v19, 0.0  ;;  %v505_v27 = vld [vmem:[#allocation2 + $0x38] sm:$0xff]  ;;  %v55_v28 = vmul.f32 %v389_v22, %v502_v24  ;;  %vm112_vm7 = vcmask 1047559   ;;  %s465_s0 = smov [#allocation5]   ;;  %s365_s16 = sshll.u32 %s577_s1, 4  ;;  %s366_s16 = int_to_ptr.hbm [resolvable:$true] %s365_s16 }
   0xd   :  { %71 = vadd.xlane.f32.xlu2 %v70_v17  ;;  %v73_v26 = vsel %vm57_vm0, %v54_v20, 0.0  ;;  %v56_v29 = vmul.f32 %v390_v25, %v505_v27  ;;  %vm115_vm8 = vcmask 64512   ;;  %v464_v58 = vmov 0   ;;  %s363_s13 = sshll.u32 %s465_s0, 4  ;;  %s364_s13 = int_to_ptr.vmem [resolvable:$true] %s363_s13 }
   0xe   :  { %v76_v30 = vsel %vm57_vm0, %v55_v28, 0.0  ;;  %382 = vset.pattern.permute.xlu2 %v464_v58  ;;  %381 = vset.pattern.permute.xlu1 %v464_v58 }
   0xf   :  { %v79_v31 = vsel %vm57_vm0, %v56_v29, 0.0  ;;  %380 = vset.pattern.permute.xlu0 %v464_v58 }
  0x13   :  { %62 = vadd.xlane.f32.xlu0 %v61_v21  ;;  %68 = vadd.xlane.f32.xlu1 %v67_v23 }
  0x15   :  { %74 = vadd.xlane.f32.xlu2 %v73_v26 }
  0x1b   :  { %77 = vadd.xlane.f32.xlu0 %v76_v30  ;;  %80 = vadd.xlane.f32.xlu1 %v79_v31 }
  0x7e   :  { %v60_v32 = vpop.xlane.xlu0 %59  ;;  %v66_v34 = vpop.xlane.xlu1 %65 }
  0x7f   :  { %v92_v38 = vperm.slane %v60_v32, %v511_v36  ;;  %v94_v41 = vperm.slane %v66_v34, %v511_v36 }
  0x80   :  { %v72_v35 = vpop.xlane.xlu2 %71 }
  0x81   :  { %v96_v46 = vperm.slane %v72_v35, %v511_v36 }
  0x86   :  { %v63_v37 = vpop.xlane.xlu0 %62  ;;  %v69_v40 = vpop.xlane.xlu1 %68 }
  0x87   :  { %v93_v39 = vperm.slane %v63_v37, %v511_v36  ;;  %v95_v42 = vperm.slane %v69_v40, %v511_v36 }
  0x88   :  { %v75_v44 = vpop.xlane.xlu2 %74 }
  0x89   :  { %v101_v43 = vsel %vm100_vm1, %v93_v39, %v92_v38  ;;  %v97_v48 = vperm.slane %v75_v44, %v511_v36 }
  0x8a   :  { %v103_v45 = vsel %vm102_vm2, %v94_v41, %v101_v43 }
  0x8b   :  { %v105_v47 = vsel %vm104_vm3, %v95_v42, %v103_v45 }
  0x8c   :  { %v107_v49 = vsel %vm106_vm4, %v96_v46, %v105_v47 }
  0x8d   :  { %v109_v54 = vsel %vm108_vm5, %v97_v48, %v107_v49 }
  0x8e   :  { %v78_v50 = vpop.xlane.xlu0 %77  ;;  %v81_v52 = vpop.xlane.xlu1 %80 }
  0x8f   :  { %v98_v51 = vperm.slane %v78_v50, %v511_v36  ;;  %v99_v53 = vperm.slane %v81_v52, %v511_v36 }
  0x91   :  { %v111_v55 = vsel %vm110_vm6, %v98_v51, %v109_v54 }
  0x92   :  { %v113_v56 = vsel %vm112_vm7, %v99_v53, %v111_v55 }
  0x93   :  { %v116_v57 = vsel %vm115_vm8, %v113_v56, -inf }
  0x94   :  { %117 = vmax.xlane.f32.xlu2 %v116_v57 }
 0x107   :  { %v118_v59 = vpop.xlane.xlu2 %117 }
 0x108   :  { %v122_v60 = vperm.slane %v118_v59, 2  ;;  %v121_v61 = vperm.slane %v118_v59, 1  ;;  %v120_v62 = vperm.slane %v118_v59, 0  ;;  %v123_v4 = vperm.slane %v118_v59, 3 }
 0x109   :  { %v124_v6 = vperm.slane %v118_v59, 4  ;;  %v127_v7 = vperm.slane %v118_v59, 7  ;;  %v125_v18 = vperm.slane %v118_v59, 5  ;;  %v126_v20 = vperm.slane %v118_v59, 6 }
 0x10a   :  { %v138_v63 = vsub.f32 %v66_v34, %v122_v60  ;;  %v137_v1 = vsub.f32 %v63_v37, %v121_v61  ;;  %v136_v3 = vsub.f32 %v60_v32, %v120_v62  ;;  %v139_v13 = vsub.f32 %v69_v40, %v123_v4 }
 0x10b   :  { %v140_v14 = vsub.f32 %v72_v35, %v124_v6  ;;  %v143_v16 = vsub.f32 %v81_v52, %v127_v7  ;;  %v141_v26 = vsub.f32 %v75_v44, %v125_v18  ;;  %v142_v28 = vsub.f32 %v78_v50, %v126_v20 }
 0x10c   :  { %v148_v9 = vmul.f32 1.442695, %v138_v63  ;;  %v146_v10 = vmul.f32 1.442695, %v137_v1  ;;  %v144_v11 = vmul.f32 1.442695, %v136_v3 }
 0x10d   :  { %v150_v17 = vmul.f32 1.442695, %v139_v13  ;;  %v152_v19 = vmul.f32 1.442695, %v140_v14  ;;  %v158_v22 = vmul.f32 1.442695, %v143_v16 }
 0x10e   :  { %391 = vpow2.f32 %v148_v9  ;;  %v154_v29 = vmul.f32 1.442695, %v141_v26  ;;  %v156_v30 = vmul.f32 1.442695, %v142_v28 }
 0x10f   :  { %393 = vpow2.f32 %v146_v10 }
 0x110   :  { %395 = vpow2.f32 %v144_v11 }
 0x111   :  { %397 = vpow2.f32 %v150_v17 }
 0x112   :  { %399 = vpow2.f32 %v152_v19 }
 0x113   :  { %401 = vpow2.f32 %v158_v22 }
 0x114   :  { %v529_v21 = vpop.eup %391  ;;  %403 = vpow2.f32 %v154_v29 }
 0x115   :  { %v394_v23 = vpop.eup %393  ;;  %175 = vperm.xlu2 %382, %v529_v21   ;;  %405 = vpow2.f32 %v156_v30 }
 0x116   :  { %v396_v25 = vpop.eup %395  ;;  %172 = vperm.xlu1 %381, %v394_v23  }
 0x117   :  { %169 = vperm.xlu0 %380, %v396_v25   ;;  %v398_v31 = vpop.eup %397 }
 0x118   :  { %v400_v32 = vpop.eup %399 }
 0x119   :  { %v402_v33 = vpop.eup %401 }
 0x11a   :  { %v404_v34 = vpop.eup %403 }
 0x11b   :  { %v406_v35 = vpop.eup %405 }
 0x11d   :  { %178 = vperm.xlu2 %382, %v398_v31  }
 0x11e   :  { %181 = vperm.xlu1 %381, %v400_v32  }
 0x11f   :  { %190 = vperm.xlu0 %380, %v402_v33  }
 0x125   :  { %184 = vperm.xlu2 %382, %v404_v34  }
 0x126   :  { %187 = vperm.xlu1 %381, %v406_v35  }
 0x16f   :  { %v176_v37 = vpop.permute.xlu2 %175 }
 0x170   :  { %v194_v45 = vperm.slane %v176_v37, %v511_v36 }
 0x177   :  { %v179_v40 = vpop.permute.xlu2 %178 }
 0x178   :  { %v195_v48 = vperm.slane %v179_v40, %v511_v36 }
 0x17f   :  { %v185_v49 = vpop.permute.xlu2 %184 }
 0x180   :  { %v197_v53 = vperm.slane %v185_v49, %v511_v36 }
 0x188   :  { %v173_v38 = vpop.permute.xlu1 %172 }
 0x189   :  { %v170_v39 = vpop.permute.xlu0 %169  ;;  %v193_v41 = vperm.slane %v173_v38, %v511_v36 }
 0x18a   :  { %v192_v42 = vperm.slane %v170_v39, %v511_v36 }
 0x18c   :  { %v200_v43 = vsel %vm100_vm1, %v193_v41, %v192_v42 }
 0x18d   :  { %v201_v46 = vsel %vm102_vm2, %v194_v45, %v200_v43 }
 0x18e   :  { %v202_v50 = vsel %vm104_vm3, %v195_v48, %v201_v46 }
 0x190   :  { %v182_v44 = vpop.permute.xlu1 %181 }
 0x191   :  { %v196_v47 = vperm.slane %v182_v44, %v511_v36  ;;  %v191_v52 = vpop.permute.xlu0 %190 }
 0x192   :  { %v199_v56 = vperm.slane %v191_v52, %v511_v36 }
 0x193   :  { %v203_v51 = vsel %vm106_vm4, %v196_v47, %v202_v50 }
 0x194   :  { %v204_v57 = vsel %vm108_vm5, %v197_v53, %v203_v51 }
 0x198   :  { %v188_v54 = vpop.permute.xlu1 %187 }
 0x199   :  { %v198_v55 = vperm.slane %v188_v54, %v511_v36 }
 0x19b   :  { %v205_v58 = vsel %vm110_vm6, %v198_v55, %v204_v57 }
 0x19c   :  { %v206_v59 = vsel %vm112_vm7, %v199_v56, %v205_v58 }
 0x19d   :  { %v208_v60 = vsel %vm115_vm8, %v206_v59, 0.0 }
 0x19e   :  { %209 = vadd.xlane.f32.xlu2 %v208_v60 }
 0x211   :  { %v210_v61 = vpop.xlane.xlu2 %209 }
 0x212   :  { %407 = vrcp.f32 %v210_v61 }
 0x218   :  { %v408_v62 = vpop.eup %407 }
 0x219   :  { %v214_v63 = vperm.slane %v408_v62, 1  ;;  %v213_v1 = vperm.slane %v408_v62, 0  ;;  %v216_v6 = vperm.slane %v408_v62, 3  ;;  %v215_v36 = vperm.slane %v408_v62, 2 }
 0x21a   :  { %v218_v10 = vperm.slane %v408_v62, 5  ;;  %v217_v11 = vperm.slane %v408_v62, 4  ;;  %v220_v16 = vperm.slane %v408_v62, 7  ;;  %v219_v17 = vperm.slane %v408_v62, 6 }
 0x21b   :  { %v230_v3 = vmul.f32 %v394_v23, %v214_v63  ;;  %v229_v4 = vmul.f32 %v396_v25, %v213_v1  ;;  %v232_v7 = vmul.f32 %v398_v31, %v216_v6  ;;  %v231_v9 = vmul.f32 %v529_v21, %v215_v36 }
 0x21c   :  { %v234_v13 = vmul.f32 %v404_v34, %v218_v10  ;;  %v233_v14 = vmul.f32 %v400_v32, %v217_v11  ;;  %v236_v18 = vmul.f32 %v402_v33, %v220_v16  ;;  %v235_v19 = vmul.f32 %v406_v35, %v219_v17 }
 0x21d   :  { %244 = vperm.xlu0 %380, %v230_v3   ;;  %239 = vperm.xlu1 %381, %v229_v4  }
 0x225   :  { %254 = vperm.xlu0 %380, %v232_v7   ;;  %249 = vperm.xlu1 %381, %v231_v9  }
 0x22d   :  { %264 = vperm.xlu0 %380, %v234_v13   ;;  %259 = vperm.xlu1 %381, %v233_v14  }
 0x235   :  { %274 = vperm.xlu0 %380, %v236_v18   ;;  %269 = vperm.xlu1 %381, %v235_v19  }
 0x28f   :  { %v245_v20 = vpop.permute.xlu0 %244  ;;  %v240_v22 = vpop.permute.xlu1 %239 }
 0x290   :  { %v278_v23 = vmul.f32 %v245_v20, %v487_v8  ;;  %v277_v21 = vmul.f32 %v240_v22, %v479_v0 }
 0x292   :  { %v292_v25 = vsel %vm57_vm0, %v278_v23, 0.0  ;;  %v285_v26 = vsel %vm57_vm0, %v277_v21, 0.0 }
 0x293   :  { %v293_v28 = vrot.slane %v292_v25, 4  ;;  %v286_v29 = vrot.slane %v285_v26, 4 }
 0x295   :  { %v294_v34 = vadd.f32 %v293_v28, %v292_v25  ;;  %v287_v35 = vadd.f32 %v286_v29, %v285_v26 }
 0x297   :  { %v255_v30 = vpop.permute.xlu0 %254  ;;  %v250_v31 = vpop.permute.xlu1 %249  ;;  %v295_v39 = vrot.slane %v294_v34, 2  ;;  %v288_v40 = vrot.slane %v287_v35, 2 }
 0x298   :  { %v280_v32 = vmul.f32 %v255_v30, %v491_v12  ;;  %v279_v33 = vmul.f32 %v250_v31, %v481_v2 }
 0x299   :  { %v296_v2 = vadd.f32 %v295_v39, %v294_v34  ;;  %v289_v47 = vadd.f32 %v288_v40, %v287_v35 }
 0x29a   :  { %v306_v37 = vsel %vm57_vm0, %v280_v32, 0.0  ;;  %v299_v8 = vsel %vm57_vm0, %v279_v33, 0.0 }
 0x29b   :  { %v307_v38 = vrot.slane %v306_v37, 4  ;;  %v300_v0 = vrot.slane %v299_v8, 4  ;;  %v297_v54 = vrot.slane %v296_v2, 1  ;;  %v290_v55 = vrot.slane %v289_v47, 1 }
 0x29d   :  { %v301_v41 = vadd.f32 %v300_v0, %v299_v8  ;;  %v308_v42 = vadd.f32 %v307_v38, %v306_v37  ;;  %v298_v1 = vadd.f32 %v297_v54, %v296_v2  ;;  %v291_v3 = vadd.f32 %v290_v55, %v289_v47 }
 0x29f   :  { %v302_v43 = vrot.slane %v301_v41, 2  ;;  %v265_v44 = vpop.permute.xlu0 %264  ;;  %v260_v45 = vpop.permute.xlu1 %259  ;;  %v309_v48 = vrot.slane %v308_v42, 2  ;;  %v349_v18 = vsel %vm100_vm1, %v298_v1, %v291_v3 }
 0x2a0   :  { %v282_v46 = vmul.f32 %v265_v44, %v494_v15  ;;  %v281_v12 = vmul.f32 %v260_v45, %v484_v5 }
 0x2a1   :  { %v303_v51 = vadd.f32 %v302_v43, %v301_v41  ;;  %v310_v58 = vadd.f32 %v309_v48, %v308_v42 }
 0x2a2   :  { %v320_v49 = vsel %vm57_vm0, %v282_v46, 0.0  ;;  %v313_v50 = vsel %vm57_vm0, %v281_v12, 0.0 }
 0x2a3   :  { %v321_v52 = vrot.slane %v320_v49, 4  ;;  %v314_v53 = vrot.slane %v313_v50, 4  ;;  %v304_v59 = vrot.slane %v303_v51, 1  ;;  %v311_v6 = vrot.slane %v310_v58, 1 }
 0x2a5   :  { %v322_v56 = vadd.f32 %v321_v52, %v320_v49  ;;  %v315_v57 = vadd.f32 %v314_v53, %v313_v50  ;;  %v305_v10 = vadd.f32 %v304_v59, %v303_v51 }
 0x2a7   :  { %v323_v60 = vrot.slane %v322_v56, 2  ;;  %v316_v15 = vrot.slane %v315_v57, 2  ;;  %v275_v61 = vpop.permute.xlu0 %274  ;;  %v270_v5 = vpop.permute.xlu1 %269 }
 0x2a8   :  { %v284_v62 = vmul.f32 %v275_v61, %v505_v27  ;;  %v283_v63 = vmul.f32 %v270_v5, %v502_v24  ;;  %v312_v27 = vadd.f32 %v311_v6, %v310_v58  ;;  %v350_v24 = vsel %vm102_vm2, %v305_v10, %v349_v18 }
 0x2a9   :  { %v317_v4 = vadd.f32 %v316_v15, %v315_v57  ;;  %v324_v36 = vadd.f32 %v323_v60, %v322_v56 }
 0x2aa   :  { %v334_v7 = vsel %vm57_vm0, %v284_v62, 0.0  ;;  %v327_v9 = vsel %vm57_vm0, %v283_v63, 0.0  ;;  %v351_v28 = vsel %vm104_vm3, %v312_v27, %v350_v24 }
 0x2ab   :  { %v318_v11 = vrot.slane %v317_v4, 1  ;;  %v335_v13 = vrot.slane %v334_v7, 4  ;;  %v328_v14 = vrot.slane %v327_v9, 4  ;;  %v325_v19 = vrot.slane %v324_v36, 1 }
 0x2ad   :  { %v336_v16 = vadd.f32 %v335_v13, %v334_v7  ;;  %v329_v17 = vadd.f32 %v328_v14, %v327_v9  ;;  %v319_v20 = vadd.f32 %v318_v11, %v317_v4  ;;  %v326_v26 = vadd.f32 %v325_v19, %v324_v36 }
 0x2af   :  { %v337_v22 = vrot.slane %v336_v16, 2  ;;  %v330_v23 = vrot.slane %v329_v17, 2  ;;  %v352_v29 = vsel %vm106_vm4, %v319_v20, %v351_v28 }
 0x2b0   :  { %v353_v34 = vsel %vm108_vm5, %v326_v26, %v352_v29 }
 0x2b1   :  { %v338_v21 = vadd.f32 %v337_v22, %v336_v16  ;;  %v331_v25 = vadd.f32 %v330_v23, %v329_v17 }
 0x2b3   :  { %v339_v30 = vrot.slane %v338_v21, 1  ;;  %v332_v31 = vrot.slane %v331_v25, 1 }
 0x2b5   :  { %v340_v32 = vadd.f32 %v339_v30, %v338_v21  ;;  %v333_v33 = vadd.f32 %v332_v31, %v331_v25 }
 0x2b7   :  { %v354_v35 = vsel %vm110_vm6, %v333_v33, %v353_v34 }
 0x2b8   :  { %v355_v37 = vsel %vm112_vm7, %v340_v32, %v354_v35 }
 0x2b9   :  { %357 = vst.msk [vmem:[#allocation5] sm:$0xff] %vm57_vm0, %v355_v37 }
 0x2ba   :  { %368 = dma.vmem_to_hbm [thread:$0]  %s364_s13, 128, %s366_s16, [#allocation4]  }
 0x2bb   :  { %459 = dma.done.wait [#allocation4], 128  }
 0x2bc   :  { %460 = vsyncadd [#allocation4], 4294967168 }
 0x2bd   :  { %373 = vsyncpa [#allocation3], 1 }
 0x2be   :  { %374 = vsyncpa [#allocation4], 1 }

</bundles_post_ra>
